<compile_context>
chip_gen: v6e
topology: v6e:2x2x1
jax: 0.10.0
libtpu: 0.0.40
codegen_flags: <defaults>
</compile_context>

<pallas_src>
import math

import jax
import jax.numpy as jnp
from jax.experimental import pallas as pl
from jax.experimental.pallas import tpu as pltpu


_MEGACORE_MIN_BYTES = 4 * 1024 * 1024  # force >=2 grid steps above this size


def _hw_params():
    """Per-generation (target_block_bytes, vmem_limit_bytes).

    v7x: smaller VMEM (64 MiB) but ~3.2 TB/s HBM -> bigger blocks to amortize
    the ~0.35 us per-grid-step overhead.  v5e/v6e: 4 MiB blocks ~94% roofline.
    """
    target = 4 * 1024 * 1024
    vmem_limit = 32 * 1024 * 1024
    try:
        info = pltpu.get_tpu_info()
        vmem_cap = getattr(info, "vmem_capacity_bytes", None)
        if vmem_cap is not None and vmem_cap <= 80 * 1024 * 1024:
            target = 6 * 1024 * 1024       # v7x-class chip
            vmem_limit = 48 * 1024 * 1024
    except Exception:
        pass
    return target, vmem_limit


def _vdrop_kernel(x_ref, m_ref, o_ref):
    """One x block times its broadcast dropout-scale mask block.

    x block : (td0, td1, th)
    m block : (td0, 1, th)  [batch_first] or (1, td1, th)  [seq-major]
    Mask is f32; the product is cast back to x.dtype.  The op is HBM-bound on
    all generations, so the VPU upcast/convert hides under DMA slack.
    """
    o_ref[...] = (x_ref[...] * m_ref[...]).astype(o_ref.dtype)


def _round8_down(n):
    return max(8, (n // 8) * 8)


def _prepare_lane_dense(x, mask, mask_axis):
    """Make the last dim a multiple of 128 (lane-dense, unmasked stores).

    Folds `f` consecutive positions of axis 1 into the lane dimension; pads
    axis 1 up to a multiple of `f` first so the fold never silently falls back
    to masked partial stores.  Returns (x_folded, mask_folded, unfold_fn).
    """
    d0, d1, h = x.shape
    if h % 128 == 0:
        return x, mask, None
    f = math.lcm(h, 128) // h
    d1p = pl.cdiv(d1, f) * f
    pad = d1p - d1
    if pad:
        x = jnp.pad(x, ((0, 0), (0, pad), (0, 0)))
        if mask_axis == 1:
            mask = jnp.pad(mask, ((0, pad), (0, 0)))
    xf = x.reshape(d0, d1p // f, f * h)
    if mask_axis == 0:
        # mask (d0, h) is constant along axis 1 -> repeat across folded lanes.
        mf = jnp.tile(mask, (1, f))
    else:
        # mask rows interleave with the fold exactly.
        mf = mask.reshape(d1p // f, f * h)

    def unfold(out):
        out = out.reshape(d0, d1p, h)
        return out[:, :d1, :] if pad else out

    return xf, mf, unfold


def _pick_tiles(d0, d1, h, itemsize, mask_axis, target_bytes):
    """Pick (td0, td1, th) so one block is ~target_bytes, respecting the
    (8,128) rule on the last two block dims, and guaranteeing >=2 grid steps
    for tensors above _MEGACORE_MIN_BYTES (v7x megacore sharding)."""
    min_td1 = d1 if d1 <= 8 else 8

    # Hidden (lane) axis: keep full unless a single (1, min_td1, h) slab is
    # already bigger than the block budget (pathologically large hidden).
    if min_td1 * h * itemsize > target_bytes and h > 128:
        th = max(128, (target_bytes // (min_td1 * itemsize) // 128) * 128)
        th = min(th, h)
    else:
        th = h

    budget = max(1, target_bytes // (th * itemsize))  # rows of (1, 1, th)

    if mask_axis == 0:
        # broadcast axis = d1 (second-to-last: mult of 8 or full); mask axis = d0.
        if d0 * min_td1 <= budget:
            td0 = d0
            td1 = min(d1, budget // d0)
            if td1 < d1:
                td1 = _round8_down(td1)
        else:
            td1 = min_td1
            td0 = max(1, min(d0, budget // td1))
    else:
        # broadcast axis = d0 (no constraint); mask axis = d1 (mult of 8 or full).
        if d1 <= budget:
            td1 = d1
            td0 = max(1, min(d0, budget // d1))
        else:
            td0 = 1
            td1 = min(d1, _round8_down(min(d1, budget)))

    # v7x megacore: make sure big tensors get at least two grid steps so the
    # "parallel" axes can shard across both TensorCores.
    total_steps = pl.cdiv(d0, td0) * pl.cdiv(d1, td1) * pl.cdiv(h, th)
    if total_steps == 1 and d0 * d1 * h * itemsize > _MEGACORE_MIN_BYTES:
        bcast_is_d1 = (mask_axis == 0)
        if bcast_is_d1 and d1 > 8:
            td1 = _round8_down(pl.cdiv(d1, 2))
        elif (not bcast_is_d1) and d0 > 1:
            td0 = pl.cdiv(d0, 2)
        elif d0 > 1:
            td0 = pl.cdiv(d0, 2)
        elif d1 > 8:
            td1 = _round8_down(pl.cdiv(d1, 2))
        elif h > 128:
            th = max(128, (pl.cdiv(h, 2) // 128) * 128)
    return td0, td1, th


def _apply_mask(x, mask, mask_axis, *, donate_x=False):
    """x: (d0, d1, h).  mask (f32):
       mask_axis == 0 -> mask (d0, h), broadcast along axis 1 (batch_first).
       mask_axis == 1 -> mask (d1, h), broadcast along axis 0 (seq-major)."""
    orig_shape = x.shape
    x, mask, unfold = _prepare_lane_dense(x, mask, mask_axis)
    d0, d1, h = x.shape
    itemsize = x.dtype.itemsize

    target_bytes, vmem_limit = _hw_params()
    td0, td1, th = _pick_tiles(d0, d1, h, itemsize, mask_axis, target_bytes)
    grid = (pl.cdiv(d0, td0), pl.cdiv(d1, td1), pl.cdiv(h, th))

    x_spec = pl.BlockSpec((td0, td1, th), lambda i, j, k: (i, j, k))
    o_spec = pl.BlockSpec((td0, td1, th), lambda i, j, k: (i, j, k))
    if mask_axis == 0:
        # (d0, 1, h): cheap sublane-broadcast load, no in-kernel replication.
        mask = mask.reshape(d0, 1, h)
        m_spec = pl.BlockSpec((td0, 1, th), lambda i, j, k: (i, 0, k))
    else:
        mask = mask.reshape(1, d1, h)
        m_spec = pl.BlockSpec((1, td1, th), lambda i, j, k: (0, j, k))

    x_bytes = x.size * itemsize
    cost = pl.CostEstimate(
        flops=x.size,
        transcendentals=0,
        bytes_accessed=2 * x_bytes + mask.size * mask.dtype.itemsize,
    )

    out = pl.pallas_call(
        _vdrop_kernel,
        out_shape=jax.ShapeDtypeStruct(x.shape, x.dtype),
        grid=grid,
        in_specs=[x_spec, m_spec],
        out_specs=o_spec,
        compiler_params=pltpu.CompilerParams(
            dimension_semantics=("parallel", "parallel", "parallel"),
            vmem_limit_bytes=vmem_limit,
        ),
        cost_estimate=cost,
        input_output_aliases=({0: 0} if donate_x else {}),
    )(x, mask)

    if unfold is not None:
        out = unfold(out)
    assert out.shape == orig_shape
    return out


def variational_dropout(x, seed, dropout, *, batch_first=False, training=True,
                        donate_x=False):
    """Forward pass of VariationalDropout on a dense 3-D tensor.

    x        : (batch, seq, hidden) if batch_first else (s0, s1, hidden)
    seed     : int seed for the dropout mask
    dropout  : drop probability p
    donate_x : alias x's HBM buffer for the output (only if x is not reused)
    """
    if (not training) or dropout <= 0.0:
        return x

    s0, s1, hidden = x.shape
    keep = 1.0 - float(dropout)
    key = jax.random.PRNGKey(seed)

    # torch: mask rows = x.size(0) (max_batch_size) in both layouts.
    keep_bits = jax.random.bernoulli(key, keep, (s0, hidden))
    # Exact f32 scale (1/(1-p)); only the product is cast to x.dtype.
    mask = jnp.where(keep_bits, 1.0 / keep, 0.0).astype(jnp.float32)

    if batch_first:
        # mask (s0, 1, hidden): varies along axis 0, broadcast along axis 1.
        return _apply_mask(x, mask, mask_axis=0, donate_x=donate_x)

    # batch_first=False: torch mask is (1, s0, hidden) broadcast against
    # x of shape (s0, s1, hidden) -> the mask indexes x's axis 1.
    if s0 == s1:
        return _apply_mask(x, mask, mask_axis=1, donate_x=donate_x)
    if s0 == 1:
        # Single mask row shared by every axis-1 position.
        return _apply_mask(x, jnp.broadcast_to(mask, (s1, hidden)),
                           mask_axis=1, donate_x=donate_x)
    # TODO(synk): s1 == 1 < s0 would require torch's mutual broadcasting to an
    # (s0, s0, hidden) output; not supported here.
    raise ValueError(
        f"mask of shape (1, {s0}, {hidden}) does not broadcast against x of "
        f"shape {x.shape} without changing its shape")


if __name__ == "__main__":
    p = 0.3
    keep = 1.0 - p

    # --- 1) training, batch_first=True: x (batch=2, seq=16, hidden=32) ---
    B, S, H = 2, 16, 32
    x = jax.random.normal(jax.random.PRNGKey(0), (B, S, H), dtype=jnp.float32)
    y = jax.block_until_ready(
        variational_dropout(x, seed=42, dropout=p, batch_first=True, training=True))
    km = jax.random.bernoulli(jax.random.PRNGKey(42), keep, (B, H))
    scale = jnp.where(km, 1.0 / keep, 0.0).astype(jnp.float32)
    expected = (x * scale[:, None, :]).astype(x.dtype)
    assert y.shape == x.shape
    assert bool(jnp.allclose(y, expected, rtol=1e-6, atol=1e-6))
    # Mask must be shared across the seq axis.
    mask0 = (y[:, 0:1, :] != 0)
    assert bool(jnp.all((y != 0) == jnp.broadcast_to(mask0, y.shape)))

    # --- 2) odd seq length (exercises pad-then-fold lane-dense path): (2, 10, 32) ---
    xo = jax.random.normal(jax.random.PRNGKey(3), (B, 10, H), dtype=jnp.float32)
    yo = jax.block_until_ready(
        variational_dropout(xo, seed=11, dropout=p, batch_first=True, training=True))
    kmo = jax.random.bernoulli(jax.random.PRNGKey(11), keep, (B, H))
    so = jnp.where(kmo, 1.0 / keep, 0.0).astype(jnp.float32)
    assert yo.shape == xo.shape
    assert bool(jnp.allclose(yo, (xo * so[:, None, :]).astype(xo.dtype),
                             rtol=1e-6, atol=1e-6))

    # --- 3) training, batch_first=False: x (8, 8, 32) (square leading dims,
    #        as the torch reference's broadcasting requires) ---
    x2 = jax.random.normal(jax.random.PRNGKey(1), (8, 8, H), dtype=jnp.float32)
    y2 = jax.block_until_ready(
        variational_dropout(x2, seed=7, dropout=p, batch_first=False, training=True))
    km2 = jax.random.bernoulli(jax.random.PRNGKey(7), keep, (8, H))
    s2 = jnp.where(km2, 1.0 / keep, 0.0).astype(jnp.float32)
    assert bool(jnp.allclose(y2, (x2 * s2[None, :, :]).astype(x2.dtype),
                             rtol=1e-6, atol=1e-6))
    # Mask shared along axis 0 (time), varies along axis 1.
    m2 = (y2[0:1, :, :] != 0)
    assert bool(jnp.all((y2 != 0) == jnp.broadcast_to(m2, y2.shape)))

    # --- 4) eval path: identity ---
    y_eval = variational_dropout(x, seed=42, dropout=p, batch_first=True, training=False)
    assert bool(jnp.allclose(y_eval, x))

    print("KERNEL_OK")
</pallas_src>

<mosaic_0001>
module attributes {stable_mosaic.version = 11 : i64} {
  func.func @_vdrop_kernel(%arg0: i32, %arg1: i32, %arg2: i32, %arg3: memref<2x4x128xf32, #tpu.memory_space<vmem>>, %arg4: memref<2x1x128xf32, #tpu.memory_space<vmem>>, %arg5: memref<2x4x128xf32, #tpu.memory_space<vmem>>) attributes {dimension_semantics = [#tpu.dimension_semantics<parallel>, #tpu.dimension_semantics<parallel>, #tpu.dimension_semantics<parallel>], iteration_bounds = array<i64: 1, 1, 1>, scalar_prefetch = 0 : i64, scratch_operands = 0 : i64, tpu.core_type = #tpu.core_type<tc>, window_params = [{transform_indices = @transform_0, window_bounds = array<i64: 2, 4, 128>}, {transform_indices = @transform_1, window_bounds = array<i64: 2, 1, 128>}, {transform_indices = @transform_2, window_bounds = array<i64: 2, 4, 128>}]} {
    %c0 = arith.constant 0 : index
    %c0_0 = arith.constant 0 : index
    %c0_1 = arith.constant 0 : index
    %0 = vector.load %arg3[%c0, %c0_0, %c0_1] : memref<2x4x128xf32, #tpu.memory_space<vmem>>, vector<2x4x128xf32>
    %c0_2 = arith.constant 0 : index
    %c0_3 = arith.constant 0 : index
    %c0_4 = arith.constant 0 : index
    %1 = vector.load %arg4[%c0_2, %c0_3, %c0_4] : memref<2x1x128xf32, #tpu.memory_space<vmem>>, vector<2x1x128xf32>
    %2 = vector.broadcast %1 : vector<2x1x128xf32> to vector<2x4x128xf32>
    %3 = arith.mulf %0, %2 : vector<2x4x128xf32>
    %c0_5 = arith.constant 0 : index
    %c0_6 = arith.constant 0 : index
    %c0_7 = arith.constant 0 : index
    %4 = vector.load %arg5[%c0_5, %c0_6, %c0_7] : memref<2x4x128xf32, #tpu.memory_space<vmem>>, vector<2x4x128xf32>
    tpu.vector_store %arg5[%c0_5, %c0_6, %c0_7], %3 {strides = array<i32>} : memref<2x4x128xf32, #tpu.memory_space<vmem>>, vector<2x4x128xf32>,
    return
  }
  func.func @transform_0(%arg0: i32, %arg1: i32, %arg2: i32) -> (i32, i32, i32) {
    %c0_i32 = arith.constant 0 : i32
    return %arg0, %arg1, %arg2 : i32, i32, i32
  }
  func.func @transform_1(%arg0: i32, %arg1: i32, %arg2: i32) -> (i32, i32, i32) {
    %c0_i32 = arith.constant 0 : i32
    %c0_i32_0 = arith.constant 0 : i32
    return %arg0, %c0_i32, %arg2 : i32, i32, i32
  }
  func.func @transform_2(%arg0: i32, %arg1: i32, %arg2: i32) -> (i32, i32, i32) {
    %c0_i32 = arith.constant 0 : i32
    return %arg0, %arg1, %arg2 : i32, i32, i32
  }
}

</mosaic_0001>

<bundles_post_ra>
// kernel: tpu_custom_call.1
= control target key start
LH: loop header
LB: loop body
LE: loop exit
PB: predicated region body
PF: predicated region fallthrough
CT: control target
= control target key end

     0   :  { %7 = vsyncpa [#allocation3], 0  ;;  %s190_s0 = inlined_call_operand.hbm [shape: f32[2,4,128], index: 0, kind: input, shape index: {}]   ;;  %s191_s1 = inlined_call_operand.hbm [shape: f32[2,1,128], index: 1, kind: input, shape index: {}]   ;;  %s192_s2 = inlined_call_operand.hbm [shape: f32[2,4,128], index: 2, kind: output, shape index: {}]  }
   0x1   :  { %8 = vsyncpa [#allocation6], 0 }
   0x2   :  { %9 = vsyncpa [#allocation4], 0  ;;  %s153_s9 = smov [#allocation2]  }
   0x3   :  { %s15_s10 = sshll.u32 %s153_s9, 4  ;;  %s16_s10 = int_to_ptr.vmem [resolvable:$true] %s15_s10 }
   0x4   :  { %s95_s11 = scalar_lea.vmem %s16_s10, 128  ;;  %p100_p1 = scmp.lt.s32.totalorder %s16_s10, %s16_s10 }
   0x5   :  { %p96_p0 = scmp.ne.s32.totalorder %s16_s10, %s95_s11  ;;  %p101_p2 = scmp.lt.s32.totalorder %s95_s11, %s95_s11 }
   0x7   :  { %p102_p3 = por %p101_p2, %p100_p1 }
   0x9   :  { %p103_p4 = pnand %p102_p3, %p96_p0 }
   0xb   :  { %106 = shalt.err (!%p103_p4)
}
   0xc   :  { %s154_s12 = smov 64   ;;  %s155_s13 = smov 4  }
   0xd   :  { %21 = dma.hbm_to_vmem [thread:$0]  %s190_s0, 128, %s16_s10, [#allocation3], %s154_s12, %s154_s12, %s155_s13  }
   0xe   :  { %s156_s16 = smov [#allocation5]  }
   0xf   :  { %s27_s17 = sshll.u32 %s156_s16, 4  ;;  %s28_s17 = int_to_ptr.vmem [resolvable:$true] %s27_s17 }
  0x10   :  { %s115_s18 = scalar_lea.vmem %s28_s17, 32  ;;  %p120_p6 = scmp.lt.s32.totalorder %s28_s17, %s28_s17 }
  0x11   :  { %p116_p5 = scmp.ne.s32.totalorder %s28_s17, %s115_s18  ;;  %p121_p7 = scmp.lt.s32.totalorder %s115_s18, %s115_s18 }
  0x13   :  { %p122_p8 = por %p121_p7, %p120_p6 }
  0x15   :  { %p123_p9 = pnand %p122_p8, %p116_p5 }
  0x17   :  { %126 = shalt.err (!%p123_p9)
}
  0x18   :  { %s157_s19 = smov 16   ;;  %s158_s20 = smov 1  }
  0x19   :  { %33 = dma.hbm_to_vmem [thread:$0]  %s191_s1, 32, %s28_s17, [#allocation6], %s157_s19, %s157_s19, %s158_s20  }
  0x1a   :  { %147 = dma.done.wait [#allocation3], 128  }
  0x1b   :  { %148 = vsyncadd [#allocation3], 4294967168 }
  0x1c   :  { %149 = dma.done.wait [#allocation6], 32  }
  0x1d   :  { %150 = vsyncadd [#allocation6], 4294967264  ;;  %s159_s0 = smov [#allocation7]   ;;  %v40_v0 = vld [vmem:[#allocation2] sm:$0xf] }
  0x1e   :  { %s65_s23 = sshll.u32 %s159_s0, 4  ;;  %v78_v1 = vld [vmem:[#allocation5] ss:$0 sm:$0xff]  ;;  %v41_v2 = vld [vmem:[#allocation2 + $0x4] sm:$0xf]  ;;  %s66_s23 = int_to_ptr.vmem [resolvable:$true] %s65_s23 }
  0x1f   :  { %v56_v3 = vmul.f32 %v78_v1, %v40_v0  ;;  %v79_v4 = vld [vmem:[#allocation5 + $0x1] ss:$0 sm:$0xff]  ;;  %s127_s24 = scalar_lea.vmem %s66_s23, 128  ;;  %p132_p11 = scmp.lt.s32.totalorder %s66_s23, %s66_s23 }
  0x20   :  { %v57_v5 = vmul.f32 %v79_v4, %v41_v2  ;;  %p128_p10 = scmp.ne.s32.totalorder %s66_s23, %s127_s24  ;;  %p133_p12 = scmp.lt.s32.totalorder %s127_s24, %s127_s24 }
  0x21   :  { %58 = vst [vmem:[#allocation7] sm:$0xf] %v56_v3 }
  0x22   :  { %59 = vst [vmem:[#allocation7 + $0x4] sm:$0xf] %v57_v5  ;;  %p134_p13 = por %p133_p12, %p132_p11 }
  0x24   :  { %p135_p0 = pnand %p134_p13, %p128_p10 }
  0x26   :  { %138 = shalt.err (!%p135_p0)
}
  0x27   :  { %71 = dma.vmem_to_hbm [thread:$0]  %s66_s23, 128, %s192_s2, [#allocation4], %s154_s12, %s154_s12, %s155_s13  }
  0x28   :  { %151 = dma.done.wait [#allocation4], 128  }
  0x29   :  { %152 = vsyncadd [#allocation4], 4294967168 }
  0x2a   :  { %75 = vsyncpa [#allocation3], 1 }
  0x2b   :  { %76 = vsyncpa [#allocation6], 1 }
  0x2c   :  { %77 = vsyncpa [#allocation4], 1 }

</bundles_post_ra>
